<compile_context>
chip_gen: v6e
topology: v6e:2x2x1
jax: 0.10.0
libtpu: 0.0.40
codegen_flags: <defaults>
</compile_context>

<pallas_src>
import functools

import jax
import jax.numpy as jnp
from jax.experimental import pallas as pl
from jax.experimental.pallas import tpu as pltpu


def dqn_kernel(x_ref, w1_ref, b1_ref, w2_ref, b2_ref, w3_ref, b3_ref, o_ref):
    # x_ref: (TB, 18) bf16; weights bf16 (in, out); biases f32 (1, out).
    # w3_ref/b3_ref are zero-padded to 128 output columns (lane-dense store).
    # hidden_1: (TB,18) @ (18,128) -> f32, +bias, ReLU
    h1 = jnp.dot(x_ref[...], w1_ref[...], preferred_element_type=jnp.float32)
    h1 = jnp.maximum(h1 + b1_ref[...], 0.0)
    # hidden_2: (TB,128) @ (128,128) -> f32, +bias, ReLU
    h2 = jnp.dot(h1.astype(jnp.bfloat16), w2_ref[...],
                 preferred_element_type=jnp.float32)
    h2 = jnp.maximum(h2 + b2_ref[...], 0.0)
    # output: (TB,128) @ (128,128 padded) -> f32, +bias (padded lanes stay 0)
    out = jnp.dot(h2.astype(jnp.bfloat16), w3_ref[...],
                  preferred_element_type=jnp.float32)
    o_ref[...] = (out + b3_ref[...]).astype(o_ref.dtype)


def _round_up(n, m):
    return ((n + m - 1) // m) * m


_MAX_TB = 4096  # rows per tile cap; keeps VMEM footprint ~9 MiB incl. buffers


@jax.jit
def dqn_forward(x, params):
    """x: (B, 18) float32. params: bf16 weights (in, out), f32 biases (1, out).

    Returns (B, 9) float32 Q-values.
    """
    B = x.shape[0]
    # Tile selection (all static at trace time):
    #  - round batch up to a multiple of 16 (bf16 sublane packing)
    #  - single tile (grid=1) whenever it fits under _MAX_TB rows
    #  - otherwise an EVEN number of tiles (v7x megacore balance), each <= cap
    Bp16 = _round_up(B, 16)
    if Bp16 <= _MAX_TB:
        TB = Bp16
        Bp = Bp16
    else:
        n_tiles = 2 * pl.cdiv(Bp16, 2 * _MAX_TB)          # even tile count
        TB = _round_up(pl.cdiv(Bp16, n_tiles), 16)
        Bp = TB * n_tiles
    grid = Bp // TB

    xb = x.astype(jnp.bfloat16)
    if Bp != B:
        xb = jnp.pad(xb, ((0, Bp - B), (0, 0)))

    w1, b1, w2, b2, w3, b3 = (
        params["w1"], params["b1"], params["w2"],
        params["b2"], params["w3"], params["b3"],
    )
    # Lane-dense final layer: pad N3 from 9 -> 128 with zeros (free on MXU,
    # turns the 9-lane masked store into a full 128-lane unmasked store).
    N_PAD = 128
    w3p = jnp.pad(w3, ((0, 0), (0, N_PAD - w3.shape[1])))
    b3p = jnp.pad(b3, ((0, 0), (0, N_PAD - b3.shape[1])))

    # Weights/biases: full-array blocks, constant index map -> VMEM-resident
    # across grid steps (no re-DMA).
    def resident(a):
        return pl.BlockSpec(a.shape, lambda i: tuple(0 for _ in a.shape))

    out = pl.pallas_call(
        dqn_kernel,
        out_shape=jax.ShapeDtypeStruct((Bp, N_PAD), jnp.float32),
        grid=(grid,),
        in_specs=[
            pl.BlockSpec((TB, 18), lambda i: (i, 0)),   # x: batch-tiled
            resident(w1), resident(b1),
            resident(w2), resident(b2),
            resident(w3p), resident(b3p),
        ],
        out_specs=pl.BlockSpec((TB, N_PAD), lambda i: (i, 0)),
        compiler_params=pltpu.CompilerParams(
            dimension_semantics=("parallel",)),
    )(xb, w1, b1, w2, b2, w3p, b3p)
    return out[:B, :9]


def init_params(key):
    """PyTorch nn.Linear default init U[-1/sqrt(fan_in), 1/sqrt(fan_in)].
    Weights stored transposed (in, out) in bf16; biases (1, out) in f32."""
    def linear(key, fan_in, fan_out):
        kw, kb = jax.random.split(key)
        bound = 1.0 / jnp.sqrt(fan_in)
        w = jax.random.uniform(kw, (fan_in, fan_out), jnp.float32, -bound, bound)
        b = jax.random.uniform(kb, (1, fan_out), jnp.float32, -bound, bound)
        return w.astype(jnp.bfloat16), b

    k1, k2, k3 = jax.random.split(key, 3)
    w1, b1 = linear(k1, 18, 128)
    w2, b2 = linear(k2, 128, 128)
    w3, b3 = linear(k3, 128, 9)
    return {"w1": w1, "b1": b1, "w2": w2, "b2": b2, "w3": w3, "b3": b3}


def reference_forward(x, p):
    """Pure-JAX reference mirroring the kernel's bf16-input / f32-accumulate math."""
    f32 = jnp.float32
    xf = x.astype(jnp.bfloat16).astype(f32)
    w1 = p["w1"].astype(f32); w2 = p["w2"].astype(f32); w3 = p["w3"].astype(f32)
    h1 = jnp.maximum(xf @ w1 + p["b1"], 0.0)
    h1 = h1.astype(jnp.bfloat16).astype(f32)
    h2 = jnp.maximum(h1 @ w2 + p["b2"], 0.0)
    h2 = h2.astype(jnp.bfloat16).astype(f32)
    return h2 @ w3 + p["b3"]


if __name__ == "__main__":
    key = jax.random.PRNGKey(0)
    kp, kx1, kx2 = jax.random.split(key, 3)
    params = init_params(kp)

    # Small batch (single tile, padded 8 -> 16 rows).
    B1 = 8
    x1 = jax.random.normal(kx1, (B1, 18), jnp.float32)
    out1 = jax.block_until_ready(dqn_forward(x1, params))
    ref1 = reference_forward(x1, params)
    assert out1.shape == (B1, 9)
    assert jnp.allclose(out1, ref1, atol=2e-2, rtol=2e-2)

    # Ragged batch (single 608-row tile: exercises padding + lane-dense output).
    B2 = 600
    x2 = jax.random.normal(kx2, (B2, 18), jnp.float32)
    out2 = jax.block_until_ready(dqn_forward(x2, params))
    ref2 = reference_forward(x2, params)
    assert out2.shape == (B2, 9)
    assert jnp.allclose(out2, ref2, atol=2e-2, rtol=2e-2)

    print("KERNEL_OK")
</pallas_src>

<mosaic_0001>
module attributes {stable_mosaic.version = 11 : i64} {
  func.func @dqn_kernel(%arg0: i32, %arg1: memref<16x18xbf16, #tpu.memory_space<vmem>>, %arg2: memref<18x128xbf16, #tpu.memory_space<vmem>>, %arg3: memref<1x128xf32, #tpu.memory_space<vmem>>, %arg4: memref<128x128xbf16, #tpu.memory_space<vmem>>, %arg5: memref<1x128xf32, #tpu.memory_space<vmem>>, %arg6: memref<128x128xbf16, #tpu.memory_space<vmem>>, %arg7: memref<1x128xf32, #tpu.memory_space<vmem>>, %arg8: memref<16x128xf32, #tpu.memory_space<vmem>>) attributes {dimension_semantics = [#tpu.dimension_semantics<parallel>], iteration_bounds = array<i64: 1>, scalar_prefetch = 0 : i64, scratch_operands = 0 : i64, tpu.core_type = #tpu.core_type<tc>, window_params = [{transform_indices = @transform_0, window_bounds = array<i64: 16, 18>}, {pipeline_mode = #tpu.pipeline_mode<synchronous>, transform_indices = @transform_1, window_bounds = array<i64: 18, 128>}, {pipeline_mode = #tpu.pipeline_mode<synchronous>, transform_indices = @transform_2, window_bounds = array<i64: 1, 128>}, {pipeline_mode = #tpu.pipeline_mode<synchronous>, transform_indices = @transform_3, window_bounds = array<i64: 128, 128>}, {pipeline_mode = #tpu.pipeline_mode<synchronous>, transform_indices = @transform_4, window_bounds = array<i64: 1, 128>}, {pipeline_mode = #tpu.pipeline_mode<synchronous>, transform_indices = @transform_5, window_bounds = array<i64: 128, 128>}, {pipeline_mode = #tpu.pipeline_mode<synchronous>, transform_indices = @transform_6, window_bounds = array<i64: 1, 128>}, {transform_indices = @transform_7, window_bounds = array<i64: 16, 128>}]} {
    %c0 = arith.constant 0 : index
    %c0_0 = arith.constant 0 : index
    %0 = vector.load %arg1[%c0, %c0_0] : memref<16x18xbf16, #tpu.memory_space<vmem>>, vector<16x18xbf16>
    %c0_1 = arith.constant 0 : index
    %c0_2 = arith.constant 0 : index
    %1 = vector.load %arg2[%c0_1, %c0_2] : memref<18x128xbf16, #tpu.memory_space<vmem>>, vector<18x128xbf16>
    %cst = arith.constant dense<0.000000e+00> : vector<16x128xf32>
    %2 = tpu.matmul %0, %1, %cst {dimension_numbers = #tpu.dot_dimension_numbers<[1], [0], [0], [1], [0, 0, 1, 1], [], []>} : vector<16x18xbf16>, vector<18x128xbf16>, vector<16x128xf32> -> vector<16x128xf32>
    %c0_3 = arith.constant 0 : index
    %c0_4 = arith.constant 0 : index
    %3 = vector.load %arg3[%c0_3, %c0_4] : memref<1x128xf32, #tpu.memory_space<vmem>>, vector<1x128xf32>
    %4 = vector.broadcast %3 : vector<1x128xf32> to vector<16x128xf32>
    %5 = arith.addf %2, %4 : vector<16x128xf32>
    %cst_5 = arith.constant 0.000000e+00 : f32
    %6 = vector.broadcast %cst_5 : f32 to vector<16x128xf32>
    %7 = arith.maximumf %5, %6 : vector<16x128xf32>
    %8 = arith.truncf %7 : vector<16x128xf32> to vector<16x128xbf16>
    %c0_6 = arith.constant 0 : index
    %c0_7 = arith.constant 0 : index
    %9 = vector.load %arg4[%c0_6, %c0_7] : memref<128x128xbf16, #tpu.memory_space<vmem>>, vector<128x128xbf16>
    %cst_8 = arith.constant dense<0.000000e+00> : vector<16x128xf32>
    %10 = tpu.matmul %8, %9, %cst_8 {dimension_numbers = #tpu.dot_dimension_numbers<[1], [0], [0], [1], [0, 0, 1, 1], [], []>} : vector<16x128xbf16>, vector<128x128xbf16>, vector<16x128xf32> -> vector<16x128xf32>
    %c0_9 = arith.constant 0 : index
    %c0_10 = arith.constant 0 : index
    %11 = vector.load %arg5[%c0_9, %c0_10] : memref<1x128xf32, #tpu.memory_space<vmem>>, vector<1x128xf32>
    %12 = vector.broadcast %11 : vector<1x128xf32> to vector<16x128xf32>
    %13 = arith.addf %10, %12 : vector<16x128xf32>
    %cst_11 = arith.constant 0.000000e+00 : f32
    %14 = vector.broadcast %cst_11 : f32 to vector<16x128xf32>
    %15 = arith.maximumf %13, %14 : vector<16x128xf32>
    %16 = arith.truncf %15 : vector<16x128xf32> to vector<16x128xbf16>
    %c0_12 = arith.constant 0 : index
    %c0_13 = arith.constant 0 : index
    %17 = vector.load %arg6[%c0_12, %c0_13] : memref<128x128xbf16, #tpu.memory_space<vmem>>, vector<128x128xbf16>
    %cst_14 = arith.constant dense<0.000000e+00> : vector<16x128xf32>
    %18 = tpu.matmul %16, %17, %cst_14 {dimension_numbers = #tpu.dot_dimension_numbers<[1], [0], [0], [1], [0, 0, 1, 1], [], []>} : vector<16x128xbf16>, vector<128x128xbf16>, vector<16x128xf32> -> vector<16x128xf32>
    %c0_15 = arith.constant 0 : index
    %c0_16 = arith.constant 0 : index
    %19 = vector.load %arg7[%c0_15, %c0_16] : memref<1x128xf32, #tpu.memory_space<vmem>>, vector<1x128xf32>
    %20 = vector.broadcast %19 : vector<1x128xf32> to vector<16x128xf32>
    %21 = arith.addf %18, %20 : vector<16x128xf32>
    %c0_17 = arith.constant 0 : index
    %c0_18 = arith.constant 0 : index
    %22 = vector.load %arg8[%c0_17, %c0_18] : memref<16x128xf32, #tpu.memory_space<vmem>>, vector<16x128xf32>
    tpu.vector_store %arg8[%c0_17, %c0_18], %21 {strides = array<i32>} : memref<16x128xf32, #tpu.memory_space<vmem>>, vector<16x128xf32>,
    return
  }
  func.func @transform_0(%arg0: i32) -> (i32, i32) {
    %c0_i32 = arith.constant 0 : i32
    %c0_i32_0 = arith.constant 0 : i32
    return %arg0, %c0_i32 : i32, i32
  }
  func.func @transform_1(%arg0: i32) -> (i32, i32) {
    %c0_i32 = arith.constant 0 : i32
    %c0_i32_0 = arith.constant 0 : i32
    %c0_i32_1 = arith.constant 0 : i32
    return %c0_i32, %c0_i32_0 : i32, i32
  }
  func.func @transform_2(%arg0: i32) -> (i32, i32) {
    %c0_i32 = arith.constant 0 : i32
    %c0_i32_0 = arith.constant 0 : i32
    %c0_i32_1 = arith.constant 0 : i32
    return %c0_i32, %c0_i32_0 : i32, i32
  }
  func.func @transform_3(%arg0: i32) -> (i32, i32) {
    %c0_i32 = arith.constant 0 : i32
    %c0_i32_0 = arith.constant 0 : i32
    %c0_i32_1 = arith.constant 0 : i32
    return %c0_i32, %c0_i32_0 : i32, i32
  }
  func.func @transform_4(%arg0: i32) -> (i32, i32) {
    %c0_i32 = arith.constant 0 : i32
    %c0_i32_0 = arith.constant 0 : i32
    %c0_i32_1 = arith.constant 0 : i32
    return %c0_i32, %c0_i32_0 : i32, i32
  }
  func.func @transform_5(%arg0: i32) -> (i32, i32) {
    %c0_i32 = arith.constant 0 : i32
    %c0_i32_0 = arith.constant 0 : i32
    %c0_i32_1 = arith.constant 0 : i32
    return %c0_i32, %c0_i32_0 : i32, i32
  }
  func.func @transform_6(%arg0: i32) -> (i32, i32) {
    %c0_i32 = arith.constant 0 : i32
    %c0_i32_0 = arith.constant 0 : i32
    %c0_i32_1 = arith.constant 0 : i32
    return %c0_i32, %c0_i32_0 : i32, i32
  }
  func.func @transform_7(%arg0: i32) -> (i32, i32) {
    %c0_i32 = arith.constant 0 : i32
    %c0_i32_0 = arith.constant 0 : i32
    return %arg0, %c0_i32 : i32, i32
  }
}

</mosaic_0001>

<bundles_post_ra>
// kernel: dqn_forward.1
= control target key start
LH: loop header
LB: loop body
LE: loop exit
PB: predicated region body
PF: predicated region fallthrough
CT: control target
= control target key end

     0   :  { %vm57_vm0 = vcmask 1040384   ;;  %v451_v0 = vmov 0.0   ;;  %vm452_vm1 = vmmov 0   ;;  %vm53_vm2 = vcmask 146432   ;;  %s589_s1 = inlined_call_operand.vmem [shape: bf16[18,128], index: 1, kind: input, shape index: {}]   ;;  %s590_s0 = inlined_call_operand.vmem [shape: bf16[16,18], index: 0, kind: input, shape index: {}]   ;;  %s591_s3 = inlined_call_operand.vmem [shape: bf16[128,128], index: 3, kind: input, shape index: {}]   ;;  %s592_s5 = inlined_call_operand.vmem [shape: bf16[128,128], index: 5, kind: input, shape index: {}]   ;;  %s593_s2 = inlined_call_operand.vmem [shape: f32[1,128], index: 2, kind: input, shape index: {}]   ;;  %s594_s4 = inlined_call_operand.vmem [shape: f32[1,128], index: 4, kind: input, shape index: {}]   ;;  %s595_s6 = inlined_call_operand.vmem [shape: f32[1,128], index: 6, kind: input, shape index: {}]   ;;  %s596_s7 = inlined_call_operand.vmem [shape: f32[16,128], index: 7, kind: output, shape index: {}]  }
   0x1   :  { %382 = vmatprep.subr.bf16.mxu0 %v451_v0  ;;  %v432_v1 = vld [vmem:[%s589_s1 + $0x8] ss:$0 sps:$4 sm:$0x11]   ;;  %386 = vmatprep.mubr.msk.bf16.mxu0 %vm452_vm1, %v451_v0  ;;  %v433_v3 = vld [vmem:[%s589_s1] sm:$0xff]   ;;  %v435_v4 = vld [vmem:[%s591_s3 + $0x38] sm:$0xff]  }
   0x2   :  { %390 = vmatprep.subr.bf16.mxu1 %v451_v0  ;;  %406 = vmatprep.mubr.msk.bf16.mxu1 %vm452_vm1, %v451_v0  ;;  %v59_v2 = vsel %vm57_vm0, %v432_v1, 0  ;;  %v436_v5 = vld [vmem:[%s591_s3 + $0x30] sm:$0xff]   ;;  %v434_v6 = vld [vmem:[%s590_s0] sm:$0xff]   ;;  %v437_v7 = vld [vmem:[%s591_s3 + $0x28] sm:$0xff]  }
   0x3   :  { %383 = vmatpush3.bf16.msra.mxu0 %v59_v2  ;;  %391 = vmatpush3.bf16.msra.mxu1 %v435_v4  ;;  %v438_v8 = vld [vmem:[%s591_s3 + $0x20] sm:$0xff]   ;;  %v439_v9 = vld [vmem:[%s591_s3 + $0x18] sm:$0xff]   ;;  %v440_v10 = vld [vmem:[%s591_s3 + $0x10] sm:$0xff]  }
   0x4   :  { %384 = vmatprep.subr.bf16.mxu0 %v451_v0  ;;  %392 = vmatprep.subr.bf16.mxu1 %v451_v0  ;;  %v441_v11 = vld [vmem:[%s591_s3 + $0x8] sm:$0xff]   ;;  %v442_v12 = vld [vmem:[%s591_s3] sm:$0xff]   ;;  %v443_v13 = vld [vmem:[%s592_s5 + $0x38] sm:$0xff]  }
   0x5   :  { %v444_v14 = vld [vmem:[%s592_s5 + $0x30] sm:$0xff]   ;;  %v445_v15 = vld [vmem:[%s592_s5 + $0x28] sm:$0xff]   ;;  %v446_v16 = vld [vmem:[%s592_s5 + $0x20] sm:$0xff]  }
   0x6   :  { %v447_v17 = vld [vmem:[%s592_s5 + $0x18] sm:$0xff]   ;;  %v338_v18 = vld [vmem:[%s593_s2] ss:$0 sm:$0xff]  ;;  %v448_v28 = vld [vmem:[%s592_s5 + $0x10] sm:$0xff]  }
   0x7   :  { %385 = vmatpush3.bf16.msra.mxu0 %v433_v3  ;;  %393 = vmatpush3.bf16.msra.mxu1 %v436_v5  ;;  %v449_v29 = vld [vmem:[%s592_s5 + $0x8] sm:$0xff]   ;;  %v450_v30 = vld [vmem:[%s592_s5] sm:$0xff]  }
   0x8   :  { %410 = vmatprep.subr.bf16.mxu0 %v451_v0  ;;  %394 = vmatprep.subr.bf16.mxu1 %v451_v0  ;;  %v343_v31 = vld [vmem:[%s594_s4] ss:$0 sm:$0xff] }
   0x9   :  { %v352_v41 = vld [vmem:[%s595_s6] ss:$0 sm:$0xff] }
   0xa   :  { %387 = vmatmul.mubr.msk.bf16.vlgmr.msra.gmra.mxu0 %vm53_vm2, %v434_v6 }
   0xb   :  { %426 = vmatprep.mubr.msk.bf16.mxu0 %vm452_vm1, %v451_v0  ;;  %395 = vmatpush3.bf16.msra.mxu1 %v437_v7 }
   0xc   :  { %396 = vmatprep.subr.bf16.mxu1 %v451_v0  ;;  %411 = vmatpush3.bf16.msra.mxu0 %v443_v13 }
   0xd   :  { %412 = vmatprep.subr.bf16.mxu0 %v451_v0 }
   0xf   :  { %397 = vmatpush3.bf16.msra.mxu1 %v438_v8 }
  0x10   :  { %398 = vmatprep.subr.bf16.mxu1 %v451_v0  ;;  %413 = vmatpush3.bf16.msra.mxu0 %v444_v14 }
  0x11   :  { %414 = vmatprep.subr.bf16.mxu0 %v451_v0 }
  0x13   :  { %399 = vmatpush3.bf16.msra.mxu1 %v439_v9 }
  0x14   :  { %400 = vmatprep.subr.bf16.mxu1 %v451_v0  ;;  %415 = vmatpush3.bf16.msra.mxu0 %v445_v15 }
  0x15   :  { %416 = vmatprep.subr.bf16.mxu0 %v451_v0 }
  0x17   :  { %401 = vmatpush3.bf16.msra.mxu1 %v440_v10 }
  0x18   :  { %402 = vmatprep.subr.bf16.mxu1 %v451_v0  ;;  %417 = vmatpush3.bf16.msra.mxu0 %v446_v16 }
  0x19   :  { %418 = vmatprep.subr.bf16.mxu0 %v451_v0 }
  0x1b   :  { %403 = vmatpush3.bf16.msra.mxu1 %v441_v11 }
  0x1c   :  { %404 = vmatprep.subr.bf16.mxu1 %v451_v0  ;;  %419 = vmatpush3.bf16.msra.mxu0 %v447_v17 }
  0x1d   :  { %420 = vmatprep.subr.bf16.mxu0 %v451_v0 }
  0x1f   :  { %405 = vmatpush3.bf16.msra.mxu1 %v442_v12 }
  0x20   :  { %421 = vmatpush3.bf16.msra.mxu0 %v448_v28 }
  0x21   :  { %422 = vmatprep.subr.bf16.mxu0 %v451_v0 }
  0x24   :  { %423 = vmatpush3.bf16.msra.mxu0 %v449_v29 }
  0x25   :  { %424 = vmatprep.subr.bf16.mxu0 %v451_v0 }
  0x28   :  { %425 = vmatpush3.bf16.msra.mxu0 %v450_v30 }
  0xca   :  { %v95_v19 = vpop.f32.mrf.mxu0 }
  0xcb   :  { %v96_v21 = vadd.f32 %v338_v18, %v95_v19 }
  0xcc   :  { %v388_v20 = vpop.f32.mrf.mxu0 }
  0xcd   :  { %v102_v25 = vmax.f32 %v96_v21, 0.0 }
  0xce   :  { %v98_v22 = vpop.f32.mrf.mxu0 }
  0xcf   :  { %v99_v23 = vadd.f32 %v338_v18, %v98_v22 }
  0xd0   :  { %v389_v24 = vpop.f32.mrf.mxu0 }
  0xd1   :  { %v103_v26 = vmax.f32 %v99_v23, 0.0 }
  0xd3   :  { %v104_v27 = vpack.c.bf16 %v103_v26, %v102_v25 }
  0xd5   :  { %407 = vmatmul.mubr.bf16.vlgmr.msra.gmra.mxu1 %v104_v27 }
 0x195   :  { %v210_v32 = vpop.f32.mrf.mxu1 }
 0x196   :  { %v211_v34 = vadd.f32 %v343_v31, %v210_v32 }
 0x197   :  { %v408_v33 = vpop.f32.mrf.mxu1 }
 0x198   :  { %v217_v38 = vmax.f32 %v211_v34, 0.0 }
 0x199   :  { %v213_v35 = vpop.f32.mrf.mxu1 }
 0x19a   :  { %v214_v36 = vadd.f32 %v343_v31, %v213_v35 }
 0x19b   :  { %v409_v37 = vpop.f32.mrf.mxu1 }
 0x19c   :  { %v218_v39 = vmax.f32 %v214_v36, 0.0 }
 0x19e   :  { %v219_v40 = vpack.c.bf16 %v218_v39, %v217_v38 }
 0x1a0   :  { %427 = vmatmul.mubr.bf16.vlgmr.msra.gmra.mxu0 %v219_v40 }
 0x260   :  { %v325_v42 = vpop.f32.mrf.mxu0 }
 0x261   :  { %v326_v43 = vadd.f32 %v352_v41, %v325_v42 }
 0x262   :  { %v428_v44 = vpop.f32.mrf.mxu0 }
 0x263   :  { %332 = vst [vmem:[%s596_s7] sm:$0xff] %v326_v43 }
 0x264   :  { %v328_v45 = vpop.f32.mrf.mxu0 }
 0x265   :  { %v329_v46 = vadd.f32 %v352_v41, %v328_v45 }
 0x266   :  { %v429_v47 = vpop.f32.mrf.mxu0 }
 0x267   :  { %333 = vst [vmem:[%s596_s7 + $0x8] sm:$0xff] %v329_v46 }

</bundles_post_ra>
